<compile_context>
chip_gen: v7x
topology: tpu7x:2x2x1
jax: 0.10.0
libtpu: 0.0.40
codegen_flags: <defaults>
</compile_context>

<pallas_src>
import jax
import jax.numpy as jnp
from jax.experimental import pallas as pl
from jax.experimental.pallas import tpu as pltpu

HIDDEN = 256
HALF = HIDDEN // 2        # 128
QUARTER = HIDDEN // 4     # 64
IN_DIM = 28 * 28          # 784
NUM_CLASSES = 10
OUT_PAD = 128             # lane-dense padded output width for lin3
DEFAULT_BLOCK_B = 1024    # batch-tile upper bound (sweep 1024/2048 per-chip)


def _round_up(n, m):
    return ((n + m - 1) // m) * m


def _maxout_net_kernel(x_ref, w1_ref, b1_ref, w2_ref, b2_ref, w3_ref, b3_ref,
                       out_ref):
    # x arrives in its native dtype (f32 or bf16); cast for the MXU here so the
    # wrapper never re-stages x through HBM.
    x = x_ref[...].astype(jnp.bfloat16)                           # (TB, 784)

    h1 = jnp.dot(x, w1_ref[...], preferred_element_type=jnp.float32)
    h1 = h1 + b1_ref[...]                                         # (TB, 256) f32

    # Maxout #1 (MaxPool1d k=2): lin1 output columns were pre-permuted so the
    # pair (2k, 2k+1) sits at lanes (k, 128+k) — a vreg-aligned half split.
    m1 = jnp.maximum(h1[:, :HALF], h1[:, HALF:])                  # (TB, 128) f32

    h2 = jnp.dot(m1.astype(jnp.bfloat16), w2_ref[...],
                 preferred_element_type=jnp.float32)
    h2 = h2 + b2_ref[...]                                         # (TB, 128) f32

    # Maxout #2: pairs sit at lanes (k, 64+k).  Stay lane-dense by maxing
    # against a 64-lane rotation (XLU slot, effectively free); lanes 64..127
    # hold duplicates that w3's zero rows 64..127 annihilate.
    m2 = jnp.maximum(h2, pltpu.roll(h2, QUARTER, axis=1))         # (TB, 128) f32

    out = jnp.dot(m2.astype(jnp.bfloat16), w3_ref[...],
                  preferred_element_type=jnp.float32)
    out_ref[...] = out + b3_ref[...]                              # (TB, 128) f32


def _pair_permutation(n):
    """Even indices first, odd indices second.

    Applied to a linear layer's output columns, MaxPool1d(kernel=2) over
    features becomes max(first_half, second_half) — a lane-contiguous maximum.
    """
    return jnp.concatenate([jnp.arange(0, n, 2), jnp.arange(1, n, 2)])


def prepare_params(params):
    """One-time parameter prep (permute / pad / cast).  Cache the result."""
    p1 = _pair_permutation(HIDDEN)
    p2 = _pair_permutation(HALF)
    w1p = params["w1"][:, p1].astype(jnp.bfloat16)                 # (784, 256)
    b1p = params["b1"][:, p1].astype(jnp.float32)                  # (1, 256)
    w2p = params["w2"][:, p2].astype(jnp.bfloat16)                 # (128, 128)
    b2p = params["b2"][:, p2].astype(jnp.float32)                  # (1, 128)
    # w3: pad K 64->128 (zero rows kill the duplicated roll lanes) and
    # N 10->128 (lane-dense output); b3: pad N 10->128.
    w3p = jnp.pad(params["w3"], ((0, QUARTER), (0, OUT_PAD - NUM_CLASSES))
                  ).astype(jnp.bfloat16)                           # (128, 128)
    b3p = jnp.pad(params["b3"], ((0, 0), (0, OUT_PAD - NUM_CLASSES))
                  ).astype(jnp.float32)                            # (1, 128)
    return (w1p, b1p, w2p, b2p, w3p, b3p)


def mnist_maxout_forward(x, prepared_params, *, block_b=DEFAULT_BLOCK_B):
    """x: (B, 784), f32 or bf16. prepared_params: output of prepare_params."""
    w1p, b1p, w2p, b2p, w3p, b3p = prepared_params
    B = x.shape[0]

    # Adaptive batch tile: as large as block_b allows, but sized from B so the
    # only waste is (at most) one partial edge block handled by the cdiv grid.
    sub = 8 if x.dtype.itemsize >= 4 else 16
    n_blocks = max(1, -(-B // block_b))
    tb = _round_up(-(-B // n_blocks), sub)
    grid_b = -(-B // tb)

    flops = 2 * B * (IN_DIM * HIDDEN + HALF * HALF + HALF * OUT_PAD)
    w_bytes = (IN_DIM * HIDDEN + HALF * HALF + HALF * OUT_PAD) * 2 \
        + (HIDDEN + HALF + OUT_PAD) * 4
    bytes_accessed = B * IN_DIM * int(x.dtype.itemsize) + B * OUT_PAD * 4 + w_bytes

    out = pl.pallas_call(
        _maxout_net_kernel,
        out_shape=jax.ShapeDtypeStruct((B, OUT_PAD), jnp.float32),
        grid=(grid_b,),
        in_specs=[
            pl.BlockSpec((tb, IN_DIM), lambda i: (i, 0)),        # x tile (streamed)
            pl.BlockSpec((IN_DIM, HIDDEN), lambda i: (0, 0)),    # w1 (VMEM-resident)
            pl.BlockSpec((1, HIDDEN), lambda i: (0, 0)),         # b1
            pl.BlockSpec((HALF, HALF), lambda i: (0, 0)),        # w2
            pl.BlockSpec((1, HALF), lambda i: (0, 0)),           # b2
            pl.BlockSpec((HALF, OUT_PAD), lambda i: (0, 0)),     # w3 (K,N padded)
            pl.BlockSpec((1, OUT_PAD), lambda i: (0, 0)),        # b3 (padded)
        ],
        out_specs=pl.BlockSpec((tb, OUT_PAD), lambda i: (i, 0)),
        compiler_params=pltpu.CompilerParams(
            dimension_semantics=("parallel",),
            vmem_limit_bytes=32 * 1024 * 1024),
        cost_estimate=pl.CostEstimate(
            flops=flops, transcendentals=0, bytes_accessed=bytes_accessed),
    )(x, w1p, b1p, w2p, b2p, w3p, b3p)

    return out[:, :NUM_CLASSES]


def init_params(key):
    """Deterministic Linear-style init: U(-1/sqrt(fan_in), 1/sqrt(fan_in))."""
    ks = jax.random.split(key, 6)

    def lin(kw, kb, fan_in, fan_out):
        bound = 1.0 / jnp.sqrt(fan_in)
        w = jax.random.uniform(kw, (fan_in, fan_out), jnp.float32, -bound, bound)
        b = jax.random.uniform(kb, (1, fan_out), jnp.float32, -bound, bound)
        return w, b

    w1, b1 = lin(ks[0], ks[1], IN_DIM, HIDDEN)
    w2, b2 = lin(ks[2], ks[3], HALF, HALF)
    w3, b3 = lin(ks[4], ks[5], QUARTER, NUM_CLASSES)
    return {"w1": w1, "b1": b1, "w2": w2, "b2": b2, "w3": w3, "b3": b3}


def reference_forward(x, params):
    """Pure-JAX f32 reference mirroring the PyTorch forward exactly."""
    h = x @ params["w1"] + params["b1"]                     # (B, 256)
    h = h.reshape(h.shape[0], HALF, 2).max(axis=-1)         # MaxPool1d(k=2)
    h = h @ params["w2"] + params["b2"]                     # (B, 128)
    h = h.reshape(h.shape[0], QUARTER, 2).max(axis=-1)      # MaxPool1d(k=2)
    return h @ params["w3"] + params["b3"]                  # (B, 10)


if __name__ == "__main__":
    key = jax.random.PRNGKey(0)
    k_x, k_x2, k_p = jax.random.split(key, 3)

    params = init_params(k_p)
    prepared = prepare_params(params)      # one-time weight prep (cached)

    # Case 1: small batch, single grid step, exact tile fit.
    B = 8
    x = jax.random.normal(k_x, (B, IN_DIM), dtype=jnp.float32)
    out = jax.block_until_ready(mnist_maxout_forward(x, prepared))
    ref = reference_forward(x, params)
    assert out.shape == (B, NUM_CLASSES)
    # bf16 MXU inputs with f32 accumulation -> loose-ish tolerance vs f32 ref.
    assert jnp.allclose(out, ref, rtol=5e-2, atol=5e-2), (
        f"mismatch (B={B}), max abs err {jnp.max(jnp.abs(out - ref))}")

    # Case 2: multi-step grid with a partial edge block (exercises adaptive tb
    # and the cdiv grid; garbage rows in the edge block are never stored).
    B2 = 300
    x2 = jax.random.normal(k_x2, (B2, IN_DIM), dtype=jnp.float32)
    out2 = jax.block_until_ready(mnist_maxout_forward(x2, prepared, block_b=128))
    ref2 = reference_forward(x2, params)
    assert out2.shape == (B2, NUM_CLASSES)
    assert jnp.allclose(out2, ref2, rtol=5e-2, atol=5e-2), (
        f"mismatch (B={B2}), max abs err {jnp.max(jnp.abs(out2 - ref2))}")

    print("KERNEL_OK")
</pallas_src>

<mosaic_0001>
module attributes {stable_mosaic.version = 11 : i64} {
  func.func @_maxout_net_kernel(%arg0: i32, %arg1: memref<8x784xf32, #tpu.memory_space<vmem>>, %arg2: memref<784x256xbf16, #tpu.memory_space<vmem>>, %arg3: memref<1x256xf32, #tpu.memory_space<vmem>>, %arg4: memref<128x128xbf16, #tpu.memory_space<vmem>>, %arg5: memref<1x128xf32, #tpu.memory_space<vmem>>, %arg6: memref<128x128xbf16, #tpu.memory_space<vmem>>, %arg7: memref<1x128xf32, #tpu.memory_space<vmem>>, %arg8: memref<8x128xf32, #tpu.memory_space<vmem>>) attributes {dimension_semantics = [#tpu.dimension_semantics<parallel>], iteration_bounds = array<i64: 1>, scalar_prefetch = 0 : i64, scratch_operands = 0 : i64, tpu.core_type = #tpu.core_type<tc>, window_params = [{transform_indices = @transform_0, window_bounds = array<i64: 8, 784>}, {pipeline_mode = #tpu.pipeline_mode<synchronous>, transform_indices = @transform_1, window_bounds = array<i64: 784, 256>}, {pipeline_mode = #tpu.pipeline_mode<synchronous>, transform_indices = @transform_2, window_bounds = array<i64: 1, 256>}, {pipeline_mode = #tpu.pipeline_mode<synchronous>, transform_indices = @transform_3, window_bounds = array<i64: 128, 128>}, {pipeline_mode = #tpu.pipeline_mode<synchronous>, transform_indices = @transform_4, window_bounds = array<i64: 1, 128>}, {pipeline_mode = #tpu.pipeline_mode<synchronous>, transform_indices = @transform_5, window_bounds = array<i64: 128, 128>}, {pipeline_mode = #tpu.pipeline_mode<synchronous>, transform_indices = @transform_6, window_bounds = array<i64: 1, 128>}, {transform_indices = @transform_7, window_bounds = array<i64: 8, 128>}]} {
    %c0 = arith.constant 0 : index
    %c0_0 = arith.constant 0 : index
    %0 = vector.load %arg1[%c0, %c0_0] : memref<8x784xf32, #tpu.memory_space<vmem>>, vector<8x784xf32>
    %1 = arith.truncf %0 : vector<8x784xf32> to vector<8x784xbf16>
    %c0_1 = arith.constant 0 : index
    %c0_2 = arith.constant 0 : index
    %2 = vector.load %arg2[%c0_1, %c0_2] : memref<784x256xbf16, #tpu.memory_space<vmem>>, vector<784x256xbf16>
    %cst = arith.constant dense<0.000000e+00> : vector<8x256xf32>
    %3 = tpu.matmul %1, %2, %cst {dimension_numbers = #tpu.dot_dimension_numbers<[1], [0], [0], [1], [0, 0, 1, 1], [], []>} : vector<8x784xbf16>, vector<784x256xbf16>, vector<8x256xf32> -> vector<8x256xf32>
    %c0_3 = arith.constant 0 : index
    %c0_4 = arith.constant 0 : index
    %4 = vector.load %arg3[%c0_3, %c0_4] : memref<1x256xf32, #tpu.memory_space<vmem>>, vector<1x256xf32>
    %5 = vector.broadcast %4 : vector<1x256xf32> to vector<8x256xf32>
    %6 = arith.addf %3, %5 : vector<8x256xf32>
    %7 = vector.extract_strided_slice %6 {offsets = [0, 0], sizes = [8, 128], strides = [1, 1]} : vector<8x256xf32> to vector<8x128xf32>
    %8 = vector.extract_strided_slice %6 {offsets = [0, 128], sizes = [8, 128], strides = [1, 1]} : vector<8x256xf32> to vector<8x128xf32>
    %9 = arith.maximumf %7, %8 : vector<8x128xf32>
    %10 = arith.truncf %9 : vector<8x128xf32> to vector<8x128xbf16>
    %c0_5 = arith.constant 0 : index
    %c0_6 = arith.constant 0 : index
    %11 = vector.load %arg4[%c0_5, %c0_6] : memref<128x128xbf16, #tpu.memory_space<vmem>>, vector<128x128xbf16>
    %cst_7 = arith.constant dense<0.000000e+00> : vector<8x128xf32>
    %12 = tpu.matmul %10, %11, %cst_7 {dimension_numbers = #tpu.dot_dimension_numbers<[1], [0], [0], [1], [0, 0, 1, 1], [], []>} : vector<8x128xbf16>, vector<128x128xbf16>, vector<8x128xf32> -> vector<8x128xf32>
    %c0_8 = arith.constant 0 : index
    %c0_9 = arith.constant 0 : index
    %13 = vector.load %arg5[%c0_8, %c0_9] : memref<1x128xf32, #tpu.memory_space<vmem>>, vector<1x128xf32>
    %14 = vector.broadcast %13 : vector<1x128xf32> to vector<8x128xf32>
    %15 = arith.addf %12, %14 : vector<8x128xf32>
    %c64_i32 = arith.constant 64 : i32
    %16 = tpu.dynamic_rotate %15 by %c64_i32 dim 1 : vector<8x128xf32>, i32 -> vector<8x128xf32>
    %17 = arith.maximumf %15, %16 : vector<8x128xf32>
    %18 = arith.truncf %17 : vector<8x128xf32> to vector<8x128xbf16>
    %c0_10 = arith.constant 0 : index
    %c0_11 = arith.constant 0 : index
    %19 = vector.load %arg6[%c0_10, %c0_11] : memref<128x128xbf16, #tpu.memory_space<vmem>>, vector<128x128xbf16>
    %cst_12 = arith.constant dense<0.000000e+00> : vector<8x128xf32>
    %20 = tpu.matmul %18, %19, %cst_12 {dimension_numbers = #tpu.dot_dimension_numbers<[1], [0], [0], [1], [0, 0, 1, 1], [], []>} : vector<8x128xbf16>, vector<128x128xbf16>, vector<8x128xf32> -> vector<8x128xf32>
    %c0_13 = arith.constant 0 : index
    %c0_14 = arith.constant 0 : index
    %21 = vector.load %arg7[%c0_13, %c0_14] : memref<1x128xf32, #tpu.memory_space<vmem>>, vector<1x128xf32>
    %22 = vector.broadcast %21 : vector<1x128xf32> to vector<8x128xf32>
    %23 = arith.addf %20, %22 : vector<8x128xf32>
    %c0_15 = arith.constant 0 : index
    %c0_16 = arith.constant 0 : index
    %24 = vector.load %arg8[%c0_15, %c0_16] : memref<8x128xf32, #tpu.memory_space<vmem>>, vector<8x128xf32>
    tpu.vector_store %arg8[%c0_15, %c0_16], %23 {strides = array<i32>} : memref<8x128xf32, #tpu.memory_space<vmem>>, vector<8x128xf32>,
    return
  }
  func.func @transform_0(%arg0: i32) -> (i32, i32) {
    %c0_i32 = arith.constant 0 : i32
    %c0_i32_0 = arith.constant 0 : i32
    return %arg0, %c0_i32 : i32, i32
  }
  func.func @transform_1(%arg0: i32) -> (i32, i32) {
    %c0_i32 = arith.constant 0 : i32
    %c0_i32_0 = arith.constant 0 : i32
    %c0_i32_1 = arith.constant 0 : i32
    return %c0_i32, %c0_i32_0 : i32, i32
  }
  func.func @transform_2(%arg0: i32) -> (i32, i32) {
    %c0_i32 = arith.constant 0 : i32
    %c0_i32_0 = arith.constant 0 : i32
    %c0_i32_1 = arith.constant 0 : i32
    return %c0_i32, %c0_i32_0 : i32, i32
  }
  func.func @transform_3(%arg0: i32) -> (i32, i32) {
    %c0_i32 = arith.constant 0 : i32
    %c0_i32_0 = arith.constant 0 : i32
    %c0_i32_1 = arith.constant 0 : i32
    return %c0_i32, %c0_i32_0 : i32, i32
  }
  func.func @transform_4(%arg0: i32) -> (i32, i32) {
    %c0_i32 = arith.constant 0 : i32
    %c0_i32_0 = arith.constant 0 : i32
    %c0_i32_1 = arith.constant 0 : i32
    return %c0_i32, %c0_i32_0 : i32, i32
  }
  func.func @transform_5(%arg0: i32) -> (i32, i32) {
    %c0_i32 = arith.constant 0 : i32
    %c0_i32_0 = arith.constant 0 : i32
    %c0_i32_1 = arith.constant 0 : i32
    return %c0_i32, %c0_i32_0 : i32, i32
  }
  func.func @transform_6(%arg0: i32) -> (i32, i32) {
    %c0_i32 = arith.constant 0 : i32
    %c0_i32_0 = arith.constant 0 : i32
    %c0_i32_1 = arith.constant 0 : i32
    return %c0_i32, %c0_i32_0 : i32, i32
  }
  func.func @transform_7(%arg0: i32) -> (i32, i32) {
    %c0_i32 = arith.constant 0 : i32
    %c0_i32_0 = arith.constant 0 : i32
    return %arg0, %c0_i32 : i32, i32
  }
}

</mosaic_0001>

<bundles_post_ra>
// kernel: tpu_custom_call.1
= control target key start
LH: loop header
LB: loop body
LE: loop exit
PB: predicated region body
PF: predicated region fallthrough
CT: control target
= control target key end

     0   :  { %12 = vsyncpa [#allocation3], 0  ;;  %s1735_s0 = inlined_call_operand.hbm [shape: f32[8,784], index: 0, kind: input, shape index: {}]   ;;  %s1736_s1 = inlined_call_operand.hbm [shape: bf16[784,256], index: 1, kind: input, shape index: {}]   ;;  %s1737_s2 = inlined_call_operand.vmem [shape: f32[1,256], index: 2, kind: input, shape index: {}]   ;;  %s1738_s3 = inlined_call_operand.hbm [shape: bf16[128,128], index: 3, kind: input, shape index: {}]   ;;  %s1739_s4 = inlined_call_operand.vmem [shape: f32[1,128], index: 4, kind: input, shape index: {}]   ;;  %s1740_s5 = inlined_call_operand.hbm [shape: bf16[128,128], index: 5, kind: input, shape index: {}]   ;;  %s1741_s6 = inlined_call_operand.vmem [shape: f32[1,128], index: 6, kind: input, shape index: {}]   ;;  %s1742_s7 = inlined_call_operand.hbm [shape: f32[8,128], index: 7, kind: output, shape index: {}]  }
   0x1   :  { %13 = vsyncpa [#allocation6], 0 }
   0x2   :  { %14 = vsyncpa [#allocation9], 0 }
   0x3   :  { %15 = vsyncpa [#allocation4], 0  ;;  %s1589_s24 = smov [#allocation5]   ;;  %s1471_s28 = scalar_lea.hbm %s1736_s1, 12544 }
   0x4   :  { %s31_s25 = sshll.u32 %s1589_s24, 4  ;;  %p1472_p0 = scmp.ne.s32.totalorder %s1736_s1, %s1471_s28  ;;  %s32_s25 = int_to_ptr.vmem [resolvable:$true] %s31_s25 }
   0x5   :  { %p1475_p1 = scmp.lt.u32.totalorder %s1471_s28, %s1736_s1 }
   0x7   :  { %p1477_p2 = pnand %p1475_p1, %p1472_p0 }
   0x9   :  { %1480 = shalt.err (!%p1477_p2)
}
   0xa   :  { %s1481_s10 = scalar_lea.vmem %s32_s25, 12544  ;;  %p1486_p4 = scmp.lt.s32.totalorder %s32_s25, %s32_s25 }
   0xb   :  { %p1482_p3 = scmp.ne.s32.totalorder %s32_s25, %s1481_s10  ;;  %p1487_p5 = scmp.lt.s32.totalorder %s1481_s10, %s1481_s10 }
   0xd   :  { %p1488_p6 = por %p1487_p5, %p1486_p4 }
   0xf   :  { %p1489_p7 = pnand %p1488_p6, %p1482_p3 }
  0x11   :  { %1492 = shalt.err (!%p1489_p7)
}
  0x12   :  { %s1590_s11 = smov 128   ;;  %s1591_s12 = smov 8  }
  0x13   :  { %37 = dma.hbm_to_vmem [thread:$0]  %s1736_s1, 12544, %s32_s25, [#allocation6], %s1590_s11, %s1590_s11, %s1591_s12  }
  0x14   :  { %s1592_s15 = smov [#allocation2]   ;;  %s1593_s17 = smov [#allocation7]  }
  0x15   :  { %s22_s16 = sshll.u32 %s1592_s15, 4  ;;  %s45_s18 = sshll.u32 %s1593_s17, 4  ;;  %s23_s16 = int_to_ptr.vmem [resolvable:$true] %s22_s16  ;;  %s46_s18 = int_to_ptr.vmem [resolvable:$true] %s45_s18 }
  0x16   :  { %s1493_s21 = scalar_lea.hbm %s1735_s0, 896 }
  0x17   :  { %p1494_p8 = scmp.ne.s32.totalorder %s1735_s0, %s1493_s21  ;;  %p1497_p9 = scmp.lt.u32.totalorder %s1493_s21, %s1735_s0 }
  0x19   :  { %p1499_p10 = pnand %p1497_p9, %p1494_p8 }
  0x1b   :  { %1502 = shalt.err (!%p1499_p10)
}
  0x1c   :  { %s1503_s1 = scalar_lea.vmem %s23_s16, 896  ;;  %p1508_p12 = scmp.lt.s32.totalorder %s23_s16, %s23_s16 }
  0x1d   :  { %p1504_p11 = scmp.ne.s32.totalorder %s23_s16, %s1503_s1  ;;  %p1509_p13 = scmp.lt.s32.totalorder %s1503_s1, %s1503_s1 }
  0x1f   :  { %p1510_p0 = por %p1509_p13, %p1508_p12 }
  0x21   :  { %p1511_p1 = pnand %p1510_p0, %p1504_p11 }
  0x23   :  { %1514 = shalt.err (!%p1511_p1)
}
  0x24   :  { %25 = dma.hbm_to_vmem [thread:$0]  %s1735_s0, 896, %s23_s16, [#allocation3]  }
  0x25   :  { %s1515_s30 = scalar_lea.hbm %s1738_s3, 1024 }
  0x26   :  { %p1516_p2 = scmp.ne.s32.totalorder %s1738_s3, %s1515_s30  ;;  %p1519_p3 = scmp.lt.u32.totalorder %s1515_s30, %s1738_s3 }
  0x28   :  { %p1521_p4 = pnand %p1519_p3, %p1516_p2 }
  0x2a   :  { %1524 = shalt.err (!%p1521_p4)
}
  0x2b   :  { %s1525_s12 = scalar_lea.vmem %s46_s18, 1024  ;;  %p1530_p6 = scmp.lt.s32.totalorder %s46_s18, %s46_s18 }
  0x2c   :  { %p1526_p5 = scmp.ne.s32.totalorder %s46_s18, %s1525_s12  ;;  %p1531_p7 = scmp.lt.s32.totalorder %s1525_s12, %s1525_s12 }
  0x2e   :  { %p1532_p8 = por %p1531_p7, %p1530_p6 }
  0x30   :  { %p1533_p9 = pnand %p1532_p8, %p1526_p5 }
  0x32   :  { %1536 = shalt.err (!%p1533_p9)
}
  0x33   :  { %s1594_s0 = smov 64   ;;  %s1595_s13 = smov 4  }
  0x34   :  { %51 = dma.hbm_to_vmem [thread:$0]  %s1738_s3, 1024, %s46_s18, [#allocation6], %s1594_s0, %s1594_s0, %s1595_s13  }
  0x35   :  { %s1596_s16 = smov [#allocation8]   ;;  %s1537_s21 = scalar_lea.hbm %s1740_s5, 1024 }
  0x36   :  { %s59_s17 = sshll.u32 %s1596_s16, 4  ;;  %p1538_p10 = scmp.ne.s32.totalorder %s1740_s5, %s1537_s21  ;;  %s60_s17 = int_to_ptr.vmem [resolvable:$true] %s59_s17 }
  0x37   :  { %p1541_p11 = scmp.lt.u32.totalorder %s1537_s21, %s1740_s5 }
  0x39   :  { %p1543_p12 = pnand %p1541_p11, %p1538_p10 }
  0x3b   :  { %1546 = shalt.err (!%p1543_p12)
}
  0x3c   :  { %s1547_s1 = scalar_lea.vmem %s60_s17, 1024  ;;  %p1552_p0 = scmp.lt.s32.totalorder %s60_s17, %s60_s17 }
  0x3d   :  { %p1548_p13 = scmp.ne.s32.totalorder %s60_s17, %s1547_s1  ;;  %p1553_p1 = scmp.lt.s32.totalorder %s1547_s1, %s1547_s1 }
  0x3f   :  { %p1554_p2 = por %p1553_p1, %p1552_p0 }
  0x41   :  { %p1555_p3 = pnand %p1554_p2, %p1548_p13 }
  0x43   :  { %1558 = shalt.err (!%p1555_p3)
}
  0x44   :  { %65 = dma.hbm_to_vmem [thread:$0]  %s1740_s5, 1024, %s60_s17, [#allocation9], %s1594_s0, %s1594_s0, %s1595_s13  }
  0x45   :  { %1581 = dma.done.wait [#allocation3], 896  }
  0x46   :  { %1582 = vsyncadd [#allocation3], 4294966400 }
  0x47   :  { %1583 = dma.done.wait [#allocation6], 13568  }
  0x48   :  { %1584 = vsyncadd [#allocation6], 4294953728 }
  0x49   :  { %1585 = dma.done.wait [#allocation9], 1024  }
  0x4a   :  { %1586 = vsyncadd [#allocation9], 4294966272  ;;  %v1308_v0 = vld [vmem:[#allocation5 + $0x104] ss:$8 sps:$4 sm:$0xff]   ;;  %v1310_v1 = vld [vmem:[#allocation5 + $0x100] ss:$8 sps:$4 sm:$0xff]  }
  0x4b   :  { %740 = vmatprep.subr.bf16.mxu0 %v1308_v0  ;;  %v1311_v2 = vld [vmem:[#allocation5 + $0x114] ss:$8 sps:$4 sm:$0xff]   ;;  %v1313_v3 = vld [vmem:[#allocation5 + $0x110] ss:$8 sps:$4 sm:$0xff]   ;;  %v1314_v4 = vld [vmem:[#allocation5 + $0x124] ss:$8 sps:$4 sm:$0xff]  }
  0x4c   :  { %741 = vmatpush1.bf16.msra.mxu0 %v1310_v1  ;;  %v1316_v5 = vld [vmem:[#allocation5 + $0x120] ss:$8 sps:$4 sm:$0xff]   ;;  %v1317_v6 = vld [vmem:[#allocation5 + $0x134] ss:$8 sps:$4 sm:$0xff]   ;;  %v1319_v7 = vld [vmem:[#allocation5 + $0x130] ss:$8 sps:$4 sm:$0xff]  }
  0x4d   :  { %742 = vmatprep.subr.bf16.mxu0 %v1311_v2  ;;  %v1320_v8 = vld [vmem:[#allocation5 + $0x144] ss:$8 sps:$4 sm:$0xff]   ;;  %v1322_v9 = vld [vmem:[#allocation5 + $0x140] ss:$8 sps:$4 sm:$0xff]   ;;  %v1323_v10 = vld [vmem:[#allocation5 + $0x154] ss:$8 sps:$4 sm:$0xff]  }
  0x4e   :  { %v1325_v11 = vld [vmem:[#allocation5 + $0x150] ss:$8 sps:$4 sm:$0xff]   ;;  %v1326_v12 = vld [vmem:[#allocation5 + $0x164] ss:$8 sps:$4 sm:$0xff]   ;;  %v1328_v15 = vld [vmem:[#allocation5 + $0x160] ss:$8 sps:$4 sm:$0xff]  }
  0x4f   :  { %v84_v13 = vld [vmem:[#allocation2 + $0x18] sm:$0xff]  ;;  %v1329_v16 = vld [vmem:[#allocation5 + $0x174] ss:$8 sps:$4 sm:$0xff]   ;;  %v1331_v18 = vld [vmem:[#allocation5 + $0x170] ss:$8 sps:$4 sm:$0xff]   ;;  %vm695_vm0 = vcmask 130048  }
  0x50   :  { %743 = vmatpush1.bf16.msra.mxu0 %v1313_v3  ;;  %v91_v14 = vpack.c.bf16 %v84_v13, %v84_v13  ;;  %v1362_v17 = vld [vmem:[#allocation5 + $0x4] ss:$8 sps:$4 sm:$0xff]   ;;  %v1367_v20 = vld [vmem:[#allocation5] ss:$8 sps:$4 sm:$0xff]   ;;  %v1368_v21 = vld [vmem:[#allocation5 + $0x14] ss:$8 sps:$4 sm:$0xff]  }
  0x51   :  { %744 = vmatprep.subr.bf16.mxu0 %v1314_v4  ;;  %v1332_v19 = vld [vmem:[#allocation5 + $0x184] ss:$8 sps:$4 sm:$0xff]   ;;  %699 = vmatprep.subr.bf16.mxu1 %v1362_v17  ;;  %v1373_v22 = vld [vmem:[#allocation5 + $0x10] ss:$8 sps:$4 sm:$0xff]   ;;  %v1334_v24 = vld [vmem:[#allocation5 + $0x180] ss:$8 sps:$4 sm:$0xff]  }
  0x52   :  { %772 = vmatprep.mubr.bf16.mxu0 %v91_v14  ;;  %700 = vmatpush1.bf16.msra.mxu1 %v1367_v20  ;;  %v1374_v23 = vld [vmem:[#allocation5 + $0x24] ss:$8 sps:$4 sm:$0xff]   ;;  %v1335_v25 = vld [vmem:[#allocation5 + $0x194] ss:$8 sps:$4 sm:$0xff]   ;;  %v1379_v26 = vld [vmem:[#allocation5 + $0x20] ss:$8 sps:$4 sm:$0xff]  }
  0x53   :  { %701 = vmatprep.subr.bf16.mxu1 %v1368_v21  ;;  %v1380_v27 = vld [vmem:[#allocation5 + $0x34] ss:$8 sps:$4 sm:$0xff]   ;;  %v1337_v28 = vld [vmem:[#allocation5 + $0x190] ss:$8 sps:$4 sm:$0xff]   ;;  %v1338_v29 = vld [vmem:[#allocation5 + $0x1a4] ss:$8 sps:$4 sm:$0xff]  }
  0x54   :  { %745 = vmatpush1.bf16.msra.mxu0 %v1316_v5  ;;  %v1385_v30 = vld [vmem:[#allocation5 + $0x30] ss:$8 sps:$4 sm:$0xff]   ;;  %v1386_v31 = vld [vmem:[#allocation5 + $0x44] ss:$8 sps:$4 sm:$0xff]   ;;  %v1340_v32 = vld [vmem:[#allocation5 + $0x1a0] ss:$8 sps:$4 sm:$0xff]  }
  0x55   :  { %746 = vmatprep.subr.bf16.mxu0 %v1317_v6  ;;  %v1341_v33 = vld [vmem:[#allocation5 + $0x1b4] ss:$8 sps:$4 sm:$0xff]   ;;  %v1391_v34 = vld [vmem:[#allocation5 + $0x40] ss:$8 sps:$4 sm:$0xff]   ;;  %v1343_v36 = vld [vmem:[#allocation5 + $0x1b0] ss:$8 sps:$4 sm:$0xff]  }
  0x56   :  { %702 = vmatpush1.bf16.msra.mxu1 %v1373_v22  ;;  %v1392_v35 = vld [vmem:[#allocation5 + $0x54] ss:$8 sps:$4 sm:$0xff]   ;;  %v1344_v37 = vld [vmem:[#allocation5 + $0x1c4] ss:$8 sps:$4 sm:$0xff]   ;;  %v1397_v38 = vld [vmem:[#allocation5 + $0x50] ss:$8 sps:$4 sm:$0xff]  }
  0x57   :  { %703 = vmatprep.subr.bf16.mxu1 %v1374_v23  ;;  %v1398_v39 = vld [vmem:[#allocation5 + $0x64] ss:$8 sps:$4 sm:$0xff]   ;;  %v1346_v40 = vld [vmem:[#allocation5 + $0x1c0] ss:$8 sps:$4 sm:$0xff]   ;;  %v1347_v41 = vld [vmem:[#allocation5 + $0x1d4] ss:$8 sps:$4 sm:$0xff]  }
  0x58   :  { %747 = vmatpush1.bf16.msra.mxu0 %v1319_v7  ;;  %v1403_v42 = vld [vmem:[#allocation5 + $0x60] ss:$8 sps:$4 sm:$0xff]   ;;  %v1404_v43 = vld [vmem:[#allocation5 + $0x74] ss:$8 sps:$4 sm:$0xff]   ;;  %v1349_v44 = vld [vmem:[#allocation5 + $0x1d0] ss:$8 sps:$4 sm:$0xff]  }
  0x59   :  { %748 = vmatprep.subr.bf16.mxu0 %v1320_v8  ;;  %v1350_v45 = vld [vmem:[#allocation5 + $0x1e4] ss:$8 sps:$4 sm:$0xff]   ;;  %v1409_v46 = vld [vmem:[#allocation5 + $0x70] ss:$8 sps:$4 sm:$0xff]   ;;  %v1352_v48 = vld [vmem:[#allocation5 + $0x1e0] ss:$8 sps:$4 sm:$0xff]  }
  0x5a   :  { %704 = vmatpush1.bf16.msra.mxu1 %v1379_v26  ;;  %v1410_v47 = vld [vmem:[#allocation5 + $0x84] ss:$8 sps:$4 sm:$0xff]   ;;  %v1353_v49 = vld [vmem:[#allocation5 + $0x1f4] ss:$8 sps:$4 sm:$0xff]   ;;  %v1415_v50 = vld [vmem:[#allocation5 + $0x80] ss:$8 sps:$4 sm:$0xff]  }
  0x5b   :  { %705 = vmatprep.subr.bf16.mxu1 %v1380_v27  ;;  %v1355_v51 = vld [vmem:[#allocation5 + $0x1f0] ss:$8 sps:$4 sm:$0xff]   ;;  %v1416_v52 = vld [vmem:[#allocation5 + $0x94] ss:$8 sps:$4 sm:$0xff]   ;;  %v1358_v54 = vld [vmem:[#allocation5 + $0x204] ss:$8 sps:$4 sm:$0xff]  }
  0x5c   :  { %749 = vmatpush1.bf16.msra.mxu0 %v1322_v9  ;;  %v83_v53 = vld [vmem:[#allocation2 + $0x10] sm:$0xff]  ;;  %v1422_v56 = vld [vmem:[#allocation5 + $0xa4] ss:$8 sps:$4 sm:$0xff]   ;;  %v86_v58 = vld [vmem:[#allocation2 + $0x28] sm:$0xff]  ;;  %v1597_v26 = vmov 0.0   ;;  %vm1599_vm1 = vmmov 0  }
  0x5d   :  { %750 = vmatprep.subr.bf16.mxu0 %v1323_v10  ;;  %v1421_v55 = vld [vmem:[#allocation5 + $0x90] ss:$8 sps:$4 sm:$0xff]   ;;  %v90_v57 = vpack.c.bf16 %v83_v53, %v83_v53  ;;  %v1356_v59 = vld [vmem:[#allocation5 + $0x200] ss:$8 sps:$4 sm:$0xff]   ;;  %v93_v60 = vpack.c.bf16 %v86_v58, %v86_v58  ;;  %v1361_v61 = vld [vmem:[#allocation5 + $0x214] ss:$8 sps:$4 sm:$0xff]  }
  0x5e   :  { %706 = vmatpush1.bf16.msra.mxu1 %v1385_v30  ;;  %v1427_v62 = vld [vmem:[#allocation5 + $0xa0] ss:$8 sps:$4 sm:$0xff]   ;;  %v1428_v63 = vld [vmem:[#allocation5 + $0xb4] ss:$8 sps:$4 sm:$0xff]   ;;  %v1359_v1 = vld [vmem:[#allocation5 + $0x210] ss:$8 sps:$4 sm:$0xff]  }
  0x5f   :  { %707 = vmatprep.subr.bf16.mxu1 %v1386_v31  ;;  %v82_v0 = vld [vmem:[#allocation2 + $0x8] sm:$0xff]  ;;  %v1366_v3 = vld [vmem:[#allocation5 + $0x224] ss:$8 sps:$4 sm:$0xff]   ;;  %v1364_v4 = vld [vmem:[#allocation5 + $0x220] ss:$8 sps:$4 sm:$0xff]   ;;  %s1600_s30 = smov [#allocation10]  }
  0x60   :  { %751 = vmatpush1.bf16.msra.mxu0 %v1325_v11  ;;  %v89_v2 = vpack.c.bf16 %v82_v0, %v82_v0  ;;  %v1433_v5 = vld [vmem:[#allocation5 + $0xb0] ss:$8 sps:$4 sm:$0xff]   ;;  %v1434_v6 = vld [vmem:[#allocation5 + $0xc4] ss:$8 sps:$4 sm:$0xff]   ;;  %v1372_v7 = vld [vmem:[#allocation5 + $0x234] ss:$8 sps:$4 sm:$0xff]  }
  0x61   :  { %752 = vmatprep.subr.bf16.mxu0 %v1326_v12  ;;  %v1439_v8 = vld [vmem:[#allocation5 + $0xc0] ss:$8 sps:$4 sm:$0xff]   ;;  %v1440_v9 = vld [vmem:[#allocation5 + $0xd4] ss:$8 sps:$4 sm:$0xff]   ;;  %v1370_v10 = vld [vmem:[#allocation5 + $0x230] ss:$8 sps:$4 sm:$0xff]  }
  0x62   :  { %708 = vmatpush1.bf16.msra.mxu1 %v1391_v34  ;;  %731 = vmatprep.mubr.bf16.mxu1 %v89_v2  ;;  %v1378_v11 = vld [vmem:[#allocation5 + $0x244] ss:$8 sps:$4 sm:$0xff]   ;;  %v1445_v12 = vld [vmem:[#allocation5 + $0xd0] ss:$8 sps:$4 sm:$0xff]   ;;  %v1376_v14 = vld [vmem:[#allocation5 + $0x240] ss:$8 sps:$4 sm:$0xff]  }
  0x63   :  { %709 = vmatprep.subr.bf16.mxu1 %v1392_v35  ;;  %v1446_v13 = vld [vmem:[#allocation5 + $0xe4] ss:$8 sps:$4 sm:$0xff]   ;;  %v1452_v17 = vld [vmem:[#allocation5 + $0xf4] ss:$8 sps:$4 sm:$0xff]   ;;  %v1454_v20 = vld [vmem:[#allocation5 + $0xf0] ss:$8 sps:$4 sm:$0xff]  }
  0x64   :  { %753 = vmatpush1.bf16.msra.mxu0 %v1328_v15  ;;  %v1384_v15 = vld [vmem:[#allocation5 + $0x254] ss:$8 sps:$4 sm:$0xff]   ;;  %v81_v21 = vld [vmem:[#allocation2] sm:$0xff]  ;;  %v1394_v27 = vld [vmem:[#allocation5 + $0x270] ss:$8 sps:$4 sm:$0xff]   ;;  %s1098_s8 = sshll.u32 %s1600_s30, 4  ;;  %s1099_s8 = int_to_ptr.vmem [resolvable:$true] %s1098_s8 }
  0x65   :  { %754 = vmatprep.subr.bf16.mxu0 %v1329_v16  ;;  %v1451_v16 = vld [vmem:[#allocation5 + $0xe0] ss:$8 sps:$4 sm:$0xff]   ;;  %v1396_v23 = vld [vmem:[#allocation5 + $0x274] ss:$8 sps:$4 sm:$0xff]   ;;  %v1414_v34 = vld [vmem:[#allocation5 + $0x2a4] ss:$8 sps:$4 sm:$0xff]   ;;  %p1564_p5 = scmp.lt.s32.totalorder %s1099_s8, %s1099_s8 }
  0x66   :  { %710 = vmatpush1.bf16.msra.mxu1 %v1397_v38  ;;  %v1388_v22 = vld [vmem:[#allocation5 + $0x260] ss:$8 sps:$4 sm:$0xff]   ;;  %v1408_v31 = vld [vmem:[#allocation5 + $0x294] ss:$8 sps:$4 sm:$0xff]  }
  0x67   :  { %711 = vmatprep.subr.bf16.mxu1 %v1398_v39  ;;  %v1400_v30 = vld [vmem:[#allocation5 + $0x280] ss:$8 sps:$4 sm:$0xff]   ;;  %v1459_v38 = vld [vmem:[#allocation7 + $0x20] sm:$0xff]   ;;  %v87_v53 = vld [vmem:[#allocation2 + $0x30] sm:$0xff] }
  0x68   :  { %755 = vmatpush1.bf16.msra.mxu0 %v1331_v18  ;;  %v1382_v18 = vld [vmem:[#allocation5 + $0x250] ss:$8 sps:$4 sm:$0xff]   ;;  %v1458_v35 = vld [vmem:[#allocation7 + $0x18] sm:$0xff]  }
  0x69   :  { %756 = vmatprep.subr.bf16.mxu0 %v1332_v19  ;;  %v1390_v19 = vld [vmem:[#allocation5 + $0x264] ss:$8 sps:$4 sm:$0xff]   ;;  %v1418_v39 = vld [vmem:[#allocation5 + $0x2b0] ss:$8 sps:$4 sm:$0xff]  }
  0x6a   :  { %712 = vmatpush1.bf16.msra.mxu1 %v1403_v42  ;;  %v1432_v42 = vld [vmem:[#allocation5 + $0x2d4] ss:$8 sps:$4 sm:$0xff]  }
  0x6b   :  { %713 = vmatprep.subr.bf16.mxu1 %v1404_v43  ;;  %v1430_v43 = vld [vmem:[#allocation5 + $0x2d0] ss:$8 sps:$4 sm:$0xff]  }
  0x6c   :  { %757 = vmatpush1.bf16.msra.mxu0 %v1334_v24  ;;  %v88_v24 = vpack.c.bf16 %v81_v21, %v81_v21  ;;  %v1469_v21 = vld [vmem:[#allocation8 + $0x30] sm:$0xff]  }
  0x6d   :  { %758 = vmatprep.subr.bf16.mxu0 %v1335_v25  ;;  %v1455_v25 = vld [vmem:[#allocation7] sm:$0xff]  }
  0x6e   :  { %714 = vmatpush1.bf16.msra.mxu1 %v1409_v46  ;;  %v1444_v46 = vld [vmem:[#allocation5 + $0x2f4] ss:$8 sps:$4 sm:$0xff]  }
  0x6f   :  { %715 = vmatprep.subr.bf16.mxu1 %v1410_v47  ;;  %v1442_v47 = vld [vmem:[#allocation5 + $0x2f0] ss:$8 sps:$4 sm:$0xff]  }
  0x70   :  { %759 = vmatpush1.bf16.msra.mxu0 %v1337_v28  ;;  %v1402_v28 = vld [vmem:[#allocation5 + $0x284] ss:$8 sps:$4 sm:$0xff]  }
  0x71   :  { %760 = vmatprep.subr.bf16.mxu0 %v1338_v29  ;;  %v1456_v29 = vld [vmem:[#allocation7 + $0x8] sm:$0xff]  }
  0x72   :  { %716 = vmatpush1.bf16.msra.mxu1 %v1415_v50 }
  0x73   :  { %717 = vmatprep.subr.bf16.mxu1 %v1416_v52  ;;  %v1598_v52 = vmov 0  }
  0x74   :  { %761 = vmatpush1.bf16.msra.mxu0 %v1340_v32  ;;  %v1457_v32 = vld [vmem:[#allocation7 + $0x10] sm:$0xff]  }
  0x75   :  { %762 = vmatprep.subr.bf16.mxu0 %v1341_v33  ;;  %v1406_v33 = vld [vmem:[#allocation5 + $0x290] ss:$8 sps:$4 sm:$0xff]  }
  0x76   :  { %718 = vmatpush1.bf16.msra.mxu1 %v1421_v55  ;;  %v1460_v55 = vld [vmem:[#allocation7 + $0x28] sm:$0xff]  }
  0x77   :  { %719 = vmatprep.subr.bf16.mxu1 %v1422_v56  ;;  %v1461_v56 = vld [vmem:[#allocation7 + $0x30] sm:$0xff]  }
  0x78   :  { %763 = vmatpush1.bf16.msra.mxu0 %v1343_v36  ;;  %v1412_v36 = vld [vmem:[#allocation5 + $0x2a0] ss:$8 sps:$4 sm:$0xff]  }
  0x79   :  { %764 = vmatprep.subr.bf16.mxu0 %v1344_v37  ;;  %v1420_v37 = vld [vmem:[#allocation5 + $0x2b4] ss:$8 sps:$4 sm:$0xff]  }
  0x7a   :  { %720 = vmatpush1.bf16.msra.mxu1 %v1427_v62  ;;  %v195_v62 = vlaneseq }
  0x7b   :  { %721 = vmatprep.subr.bf16.mxu1 %v1428_v63 }
  0x7c   :  { %765 = vmatpush1.bf16.msra.mxu0 %v1346_v40  ;;  %v1426_v40 = vld [vmem:[#allocation5 + $0x2c4] ss:$8 sps:$4 sm:$0xff]   ;;  %v196_v63 = vshrl.u32 %v195_v62, 7 }
  0x7d   :  { %766 = vmatprep.subr.bf16.mxu0 %v1347_v41  ;;  %v1424_v41 = vld [vmem:[#allocation5 + $0x2c0] ss:$8 sps:$4 sm:$0xff]  }
  0x7e   :  { %722 = vmatpush1.bf16.msra.mxu1 %v1433_v5  ;;  %v197_v0 = vsub.s32 0, %v196_v63  ;;  %v201_v2 = vsub.s32 1, %v196_v63 }
  0x7f   :  { %723 = vmatprep.subr.bf16.mxu1 %v1434_v6 }
  0x80   :  { %767 = vmatpush1.bf16.msra.mxu0 %v1349_v44  ;;  %v1438_v44 = vld [vmem:[#allocation5 + $0x2e4] ss:$8 sps:$4 sm:$0xff]  }
  0x81   :  { %768 = vmatprep.subr.bf16.mxu0 %v1350_v45  ;;  %v1436_v45 = vld [vmem:[#allocation5 + $0x2e0] ss:$8 sps:$4 sm:$0xff]  }
  0x82   :  { %724 = vmatpush1.bf16.msra.mxu1 %v1439_v8 }
  0x83   :  { %725 = vmatprep.subr.bf16.mxu1 %v1440_v9 }
  0x84   :  { %769 = vmatpush1.bf16.msra.mxu0 %v1352_v48  ;;  %v85_v48 = vld [vmem:[#allocation2 + $0x20] sm:$0xff] }
  0x85   :  { %770 = vmatprep.subr.bf16.mxu0 %v1353_v49  ;;  %v1450_v49 = vld [vmem:[#allocation5 + $0x304] ss:$8 sps:$4 sm:$0xff]   ;;  %v92_v50 = vpack.c.bf16 %v85_v48, %v85_v48 }
  0x86   :  { %726 = vmatpush1.bf16.msra.mxu1 %v1445_v12 }
  0x87   :  { %727 = vmatprep.subr.bf16.mxu1 %v1446_v13 }
  0x88   :  { %771 = vmatpush1.bf16.msra.mxu0 %v1355_v51  ;;  %v1448_v51 = vld [vmem:[#allocation5 + $0x300] ss:$8 sps:$4 sm:$0xff]  }
  0x89   :  { %781 = vmatprep.subr.bf16.mxu0 %v1358_v54  ;;  %v94_v54 = vpack.c.bf16 %v87_v53, %v87_v53 }
  0x8a   :  { %728 = vmatpush1.bf16.msra.mxu1 %v1451_v16  ;;  %v1464_v16 = vld [vmem:[#allocation8 + $0x8] sm:$0xff]  }
  0x8b   :  { %773 = vmatmul.mubr.bf16.vlgmr.msra.gmra.mrb[0].mxu0 %v90_v57  ;;  %729 = vmatprep.subr.bf16.mxu1 %v1452_v17  ;;  %v1462_v57 = vld [vmem:[#allocation7 + $0x38] sm:$0xff]   ;;  %v1465_v17 = vld [vmem:[#allocation8 + $0x10] sm:$0xff]  }
  0x8c   :  { %782 = vmatpush1.bf16.msra.mxu0 %v1356_v59  ;;  %813 = vmatprep.mubr.bf16.mxu0 %v93_v60 }
  0x8d   :  { %783 = vmatprep.subr.bf16.mxu0 %v1361_v61 }
  0x8e   :  { %730 = vmatpush1.bf16.msra.mxu1 %v1454_v20  ;;  %v1468_v20 = vld [vmem:[#allocation8 + $0x28] sm:$0xff]  }
  0x8f   :  { %1244 = vmatprep.subr.bf16.mxu1 %v1597_v26 }
  0x90   :  { %784 = vmatpush1.bf16.msra.mxu0 %v1359_v1  ;;  %v193_v1 = vld [vmem:[%s1737_s2] sm:$0x3] }
  0x91   :  { %785 = vmatprep.subr.bf16.mxu0 %v1366_v3  ;;  %732 = vmatmul.mubr.bf16.vlgmr.msra.gmra.mrb[0].mxu1 %v88_v24  ;;  %v198_v3 = vrot.slane %v193_v1, %v197_v0 }
  0x92   :  { %1245 = vmatpush3.bf16.msra.mxu1 %v1455_v25  ;;  %1260 = vmatprep.mubr.msk.bf16.mxu1 %vm1599_vm1, %v1597_v26 }
  0x93   :  { %1246 = vmatprep.subr.bf16.mxu1 %v1597_v26 }
  0x94   :  { %786 = vmatpush1.bf16.msra.mxu0 %v1364_v4  ;;  %v202_v4 = vrot.slane %v193_v1, %v201_v2 }
  0x95   :  { %787 = vmatprep.subr.bf16.mxu0 %v1372_v7 }
  0x96   :  { %1247 = vmatpush3.bf16.msra.mxu1 %v1456_v29 }
  0x97   :  { %1248 = vmatprep.subr.bf16.mxu1 %v1597_v26 }
  0x98   :  { %788 = vmatpush1.bf16.msra.mxu0 %v1370_v10 }
  0x99   :  { %789 = vmatprep.subr.bf16.mxu0 %v1378_v11 }
  0x9a   :  { %1249 = vmatpush3.bf16.msra.mxu1 %v1457_v32 }
  0x9b   :  { %1250 = vmatprep.subr.bf16.mxu1 %v1597_v26 }
  0x9c   :  { %790 = vmatpush1.bf16.msra.mxu0 %v1376_v14 }
  0x9d   :  { %791 = vmatprep.subr.bf16.mxu0 %v1384_v15  ;;  %v1463_v15 = vld [vmem:[#allocation8] sm:$0xff]  }
  0x9e   :  { %1251 = vmatpush3.bf16.msra.mxu1 %v1458_v35 }
  0x9f   :  { %1252 = vmatprep.subr.bf16.mxu1 %v1597_v26 }
  0xa0   :  { %792 = vmatpush1.bf16.msra.mxu0 %v1382_v18  ;;  %v1466_v18 = vld [vmem:[#allocation8 + $0x18] sm:$0xff]  }
  0xa1   :  { %793 = vmatprep.subr.bf16.mxu0 %v1390_v19  ;;  %v1467_v19 = vld [vmem:[#allocation8 + $0x20] sm:$0xff]  }
  0xa2   :  { %1253 = vmatpush3.bf16.msra.mxu1 %v1459_v38 }
  0xa3   :  { %1254 = vmatprep.subr.bf16.mxu1 %v1597_v26 }
  0xa4   :  { %794 = vmatpush1.bf16.msra.mxu0 %v1388_v22  ;;  %v1470_v22 = vld [vmem:[#allocation8 + $0x38] sm:$0xff]  }
  0xa5   :  { %795 = vmatprep.subr.bf16.mxu0 %v1396_v23  ;;  %v1208_v23 = vld [vmem:[%s1739_s4] ss:$0 sm:$0xff]  ;;  %s1559_s4 = scalar_lea.vmem %s1099_s8, 128 }
  0xa6   :  { %1255 = vmatpush3.bf16.msra.mxu1 %v1460_v55  ;;  %p1560_p4 = scmp.ne.s32.totalorder %s1099_s8, %s1559_s4  ;;  %p1565_p6 = scmp.lt.s32.totalorder %s1559_s4, %s1559_s4 }
  0xa7   :  { %1256 = vmatprep.subr.bf16.mxu1 %v1597_v26 }
  0xa8   :  { %796 = vmatpush1.bf16.msra.mxu0 %v1394_v27  ;;  %p1566_p7 = por %p1565_p6, %p1564_p5 }
  0xa9   :  { %797 = vmatprep.subr.bf16.mxu0 %v1402_v28 }
  0xaa   :  { %1257 = vmatpush3.bf16.msra.mxu1 %v1461_v56  ;;  %p1567_p8 = pnand %p1566_p7, %p1560_p4 }
  0xab   :  { %1258 = vmatprep.subr.bf16.mxu1 %v1597_v26 }
  0xac   :  { %798 = vmatpush1.bf16.msra.mxu0 %v1400_v30 }
  0xad   :  { %799 = vmatprep.subr.bf16.mxu0 %v1408_v31 }
  0xae   :  { %1259 = vmatpush3.bf16.msra.mxu1 %v1462_v57 }
  0xaf   :  { %1264 = vmatprep.subr.bf16.mxu1 %v1597_v26 }
  0xb0   :  { %800 = vmatpush1.bf16.msra.mxu0 %v1406_v33 }
  0xb1   :  { %801 = vmatprep.subr.bf16.mxu0 %v1414_v34 }
  0xb4   :  { %802 = vmatpush1.bf16.msra.mxu0 %v1412_v36 }
  0xb5   :  { %803 = vmatprep.subr.bf16.mxu0 %v1420_v37 }
  0xb8   :  { %804 = vmatpush1.bf16.msra.mxu0 %v1418_v39 }
  0xb9   :  { %805 = vmatprep.subr.bf16.mxu0 %v1426_v40 }
  0xbc   :  { %806 = vmatpush1.bf16.msra.mxu0 %v1424_v41 }
  0xbd   :  { %807 = vmatprep.subr.bf16.mxu0 %v1432_v42 }
  0xc0   :  { %808 = vmatpush1.bf16.msra.mxu0 %v1430_v43 }
  0xc1   :  { %809 = vmatprep.subr.bf16.mxu0 %v1438_v44 }
  0xc4   :  { %810 = vmatpush1.bf16.msra.mxu0 %v1436_v45 }
  0xc5   :  { %811 = vmatprep.subr.bf16.mxu0 %v1444_v46 }
  0xc8   :  { %812 = vmatpush1.bf16.msra.mxu0 %v1442_v47 }
  0xc9   :  { %822 = vmatprep.subr.bf16.mxu0 %v1450_v49 }
  0xcb   :  { %814 = vmatmul.mubr.bf16.vlgmr.msra.gmra.mrb[0].mxu0 %v92_v50 }
  0xcc   :  { %823 = vmatpush1.bf16.msra.mxu0 %v1448_v51  ;;  %854 = vmatprep.mubr.bf16.mxu0 %v1598_v52 }
  0xd7   :  { %1207 = vmatmul.mubr.msk.bf16.vlgmr.msra.gmra.mrb[0].mxu0 %vm695_vm0, %v94_v54 }
 0x164   :  { %v733_v58 = vpop.f32.mrb[0].mxu1 }
 0x165   :  { %v735_v59 = vpop.f32.mrb[1].mxu1  ;;  %v734_v5 = vadd.f32 %v733_v58, %v198_v3 }
 0x166   :  { %v737_v60 = vpop.f32.mrb[2].mxu1  ;;  %v736_v6 = vadd.f32 %v735_v59, %v202_v4 }
 0x167   :  { %v738_v61 = vpop.f32.mrb[3].mxu1 }
 0x1aa   :  { %v856_v7 = vpop.f32.mrb[0].mxu0 }
 0x1ab   :  { %v1285_v8 = vadd.f32 %v856_v7, %v734_v5  ;;  %v858_v9 = vpop.f32.mrb[1].mxu0 }
 0x1ac   :  { %v1287_v10 = vadd.f32 %v858_v9, %v736_v6  ;;  %v860_v11 = vpop.f32.mrb[2].mxu0 }
 0x1ad   :  { %v861_v12 = vpop.f32.mrb[3].mxu0 }
 0x1ae   :  { %v863_v13 = vmax.f32 %v1285_v8, %v1287_v10 }
 0x1b0   :  { %v864_v14 = vpack.c.bf16 %v863_v13, %v863_v13 }
 0x1b2   :  { %1261 = vmatmul.mubr.bf16.vlgmr.msra.gmra.mrb[4].mxu1 %v864_v14 }
 0x1b3   :  { %1280 = vmatprep.mubr.msk.bf16.mxu1 %vm1599_vm1, %v1597_v26  ;;  %1265 = vmatpush3.bf16.msra.mxu1 %v1463_v15 }
 0x1b4   :  { %1266 = vmatprep.subr.bf16.mxu1 %v1597_v26 }
 0x1b7   :  { %1267 = vmatpush3.bf16.msra.mxu1 %v1464_v16 }
 0x1b8   :  { %1268 = vmatprep.subr.bf16.mxu1 %v1597_v26 }
 0x1bb   :  { %1269 = vmatpush3.bf16.msra.mxu1 %v1465_v17 }
 0x1bc   :  { %1270 = vmatprep.subr.bf16.mxu1 %v1597_v26 }
 0x1bf   :  { %1271 = vmatpush3.bf16.msra.mxu1 %v1466_v18 }
 0x1c0   :  { %1272 = vmatprep.subr.bf16.mxu1 %v1597_v26 }
 0x1c3   :  { %1273 = vmatpush3.bf16.msra.mxu1 %v1467_v19 }
 0x1c4   :  { %1274 = vmatprep.subr.bf16.mxu1 %v1597_v26 }
 0x1c7   :  { %1275 = vmatpush3.bf16.msra.mxu1 %v1468_v20 }
 0x1c8   :  { %1276 = vmatprep.subr.bf16.mxu1 %v1597_v26 }
 0x1cb   :  { %1277 = vmatpush3.bf16.msra.mxu1 %v1469_v21 }
 0x1cc   :  { %1278 = vmatprep.subr.bf16.mxu1 %v1597_v26  ;;  %v1217_v26 = vld [vmem:[%s1741_s6] ss:$0 sm:$0xff] }
 0x1cf   :  { %1279 = vmatpush3.bf16.msra.mxu1 %v1470_v22 }
 0x285   :  { %v970_v24 = vpop.f32.mrb[4].mxu1 }
 0x286   :  { %v971_v25 = vadd.f32 %v1208_v23, %v970_v24  ;;  %v1262_v27 = vpop.f32.mrb[5].mxu1 }
 0x287   :  { %v973_v28 = vpop.f32.mrb[6].mxu1 }
 0x288   :  { %v1263_v29 = vpop.f32.mrb[7].mxu1  ;;  %976 = vrot.lane.b32.xlu0 %v971_v25, %s1594_s0 }
 0x2fa   :  { %v977_v30 = vpop.permute.xlu0 %976 }
 0x2fb   :  { %v978_v31 = vmax.f32 %v971_v25, %v977_v30 }
 0x2fd   :  { %v979_v32 = vpack.c.bf16 %v978_v31, %v978_v31 }
 0x2ff   :  { %1281 = vmatmul.mubr.bf16.vlgmr.msra.gmra.mrb[8].mxu1 %v979_v32 }
 0x3d2   :  { %v1085_v33 = vpop.f32.mrb[8].mxu1 }
 0x3d3   :  { %v1086_v34 = vadd.f32 %v1217_v26, %v1085_v33  ;;  %v1282_v35 = vpop.f32.mrb[9].mxu1 }
 0x3d4   :  { %v1088_v36 = vpop.f32.mrb[10].mxu1 }
 0x3d5   :  { %1091 = vst [vmem:[#allocation10] sm:$0xff] %v1086_v34  ;;  %v1283_v37 = vpop.f32.mrb[11].mxu1 }
 0x3d6   :  { %1570 = shalt.err (!%p1567_p8)
}
 0x3d7   :  { %s1571_s6 = scalar_lea.hbm %s1742_s7, 128 }
 0x3d8   :  { %p1572_p9 = scmp.ne.s32.totalorder %s1742_s7, %s1571_s6  ;;  %p1575_p10 = scmp.lt.u32.totalorder %s1571_s6, %s1742_s7 }
 0x3da   :  { %p1577_p11 = pnand %p1575_p10, %p1572_p9 }
 0x3dc   :  { %1580 = shalt.err (!%p1577_p11)
}
 0x3dd   :  { %1101 = dma.vmem_to_hbm [thread:$0]  %s1099_s8, 128, %s1742_s7, [#allocation4]  }
 0x3de   :  { %1587 = dma.done.wait [#allocation4], 128  }
 0x3df   :  { %1588 = vsyncadd [#allocation4], 4294967168 }
 0x3e0   :  { %1105 = vsyncpa [#allocation3], 1 }
 0x3e1   :  { %1106 = vsyncpa [#allocation6], 1 }
 0x3e2   :  { %1107 = vsyncpa [#allocation9], 1 }
 0x3e3   :  { %1108 = vsyncpa [#allocation4], 1 }

</bundles_post_ra>
